<compile_context>
chip_gen: v6e
topology: v6e:2x2x1
jax: 0.10.0
libtpu: 0.0.40
codegen_flags: <defaults>
</compile_context>

<pallas_src>
from typing import NamedTuple

import jax
import jax.numpy as jnp
from jax.experimental import pallas as pl
from jax.experimental.pallas import tpu as pltpu

# CLIP preprocessing constants (same as the torchvision Normalize in __init__)
_CLIP_MEAN = (0.48145466, 0.4578275, 0.40821073)
_CLIP_STD = (0.26862954, 0.26130258, 0.27577711)


def _round_up(x, m):
    return (x + m - 1) // m * m


# --------------------------------------------------------------------------
# Kernel: fused (normalization-folded) encode -> SVM decision function.
# Grid: (batch tiles [parallel], CHW reduction tiles [arbitrary, last]).
# --------------------------------------------------------------------------
def _model_wrapper_kernel(x_ref, w_enc_ref, w_svm_ref, b_ref, o_ref, feat_acc):
    """
    x_ref     : (bm, tk)     f32   flattened NCHW pixel tile (cast to bf16 here)
    w_enc_ref : (tk, Dpad)   bf16  normalization-folded encoder projection tile
    w_svm_ref : (Dpad, Kpad) f32   SVM weights (zero-padded)
    b_ref     : (1, Kpad)    f32   SVM bias with normalization shift folded in
    o_ref     : (bm, Kpad)   f32   SVM decision values (lane-dense, padded)
    feat_acc  : (bm, Dpad)   f32   scratch accumulator for image_features
    """
    k = pl.program_id(1)

    @pl.when(k == 0)
    def _():
        feat_acc[...] = jnp.zeros_like(feat_acc)

    # clip_model.encode_image(...) (stand-in linear projection); bf16 MXU
    # operands, f32 accumulation.  The in-kernel cast replaces a wrapper-side
    # full pass over the pixel tensor.
    feat_acc[...] += jnp.dot(x_ref[...].astype(jnp.bfloat16), w_enc_ref[...],
                             preferred_element_type=jnp.float32)

    @pl.when(k == pl.num_programs(1) - 1)
    def _():
        # self.svm(image_features.float()) -- small f32 matmul + bias.
        o_ref[...] = jnp.dot(feat_acc[...], w_svm_ref[...],
                             preferred_element_type=jnp.float32) + b_ref[...]


# --------------------------------------------------------------------------
# One-time (model-load) weight preparation: fold Normalize, cast, pad.
# --------------------------------------------------------------------------
class ModelWrapperParams(NamedTuple):
    w_enc: jax.Array       # (CHWp, Dpad) bf16, normalization folded in
    w_svm: jax.Array       # (Dpad, Kpad) f32
    b: jax.Array           # (1, Kpad)    f32, normalization shift folded in
    image_shape: tuple     # (C, H, W)
    CHW: int
    CHWp: int
    tk: int
    D: int
    Dpad: int
    K: int
    Kpad: int


def _pick_tk(CHW, tk_cap):
    """Largest multiple-of-128 tile <= tk_cap that divides CHW (no tail pad)."""
    best = None
    t = 128
    while t <= min(tk_cap, CHW):
        if CHW % t == 0:
            best = t
        t += 128
    if best is not None:
        return best, CHW
    # Fallback: pad CHW to a multiple of 128 and tile the padded extent.
    CHWp = _round_up(CHW, 128)
    best = 128
    t = 128
    while t <= min(tk_cap, CHWp):
        if CHWp % t == 0:
            best = t
        t += 128
    return best, CHWp


def prepare_model_wrapper_params(w_enc, w_svm, b_svm, image_shape, *,
                                 tk_cap=3072):
    """Fold transforms.Normalize into the weights and pad once, at load time.

    w_enc : (C*H*W, D)  encode_image stand-in projection
    w_svm : (D, K)      SVM weights
    b_svm : (K,)        SVM bias
    """
    C, H, W = image_shape
    assert C == 3, "CLIP preprocessing expects RGB (C == 3) inputs"
    CHW = C * H * W
    D = w_enc.shape[1]
    K = w_svm.shape[1]
    assert w_enc.shape[0] == CHW

    w_enc = w_enc.astype(jnp.float32)
    w_svm = w_svm.astype(jnp.float32)
    b_svm = b_svm.astype(jnp.float32)

    #   (x - mean) * stdinv @ W = x @ (stdinv * W) + (-mean) @ (stdinv * W)
    mean = jnp.asarray(_CLIP_MEAN, jnp.float32)
    stdinv = 1.0 / jnp.asarray(_CLIP_STD, jnp.float32)
    scale_flat = jnp.repeat(stdinv, H * W)                         # (CHW,)
    mean_flat = jnp.repeat(mean, H * W)                            # (CHW,)
    w_enc_folded = (w_enc * scale_flat[:, None]).astype(jnp.bfloat16)
    # Bias shift computed with the SAME bf16-rounded folded weights the data
    # path uses (self-consistent rounding).
    shift_feat = (-mean_flat) @ w_enc_folded.astype(jnp.float32)   # (D,)
    b_out = b_svm + shift_feat @ w_svm                             # (K,)

    # Padding so every tile is (8,128)-aligned, lane-dense, and 256-aligned on
    # the MXU N dimension (v6e/v7x 256x256 MXU).
    tk, CHWp = _pick_tk(CHW, tk_cap)
    Dpad = _round_up(D, 256)
    Kpad = _round_up(K, 128)

    w_enc_p = jnp.zeros((CHWp, Dpad), jnp.bfloat16).at[:CHW, :D].set(w_enc_folded)
    w_svm_p = jnp.zeros((Dpad, Kpad), jnp.float32).at[:D, :K].set(w_svm)
    b_p = jnp.zeros((1, Kpad), jnp.float32).at[0, :K].set(b_out)

    return ModelWrapperParams(w_enc=w_enc_p, w_svm=w_svm_p, b=b_p,
                              image_shape=(C, H, W), CHW=CHW, CHWp=CHWp,
                              tk=tk, D=D, Dpad=Dpad, K=K, Kpad=Kpad)


# --------------------------------------------------------------------------
# Per-call forward.
# --------------------------------------------------------------------------
def _pick_batch_tiling(B, bm_cap):
    Bp = _round_up(B, 8)
    if Bp <= 8:
        return Bp, Bp                      # too small to split
    # >= 2 batch tiles so the "parallel" axis shards across both TensorCores
    # on v7x; otherwise keep the tiles as large as possible so the folded
    # encoder weight is re-streamed from HBM as few times as possible.
    n_tiles = max(2, pl.cdiv(Bp, bm_cap))
    bm = min(bm_cap, _round_up(pl.cdiv(Bp, n_tiles), 8))
    n_tiles = pl.cdiv(Bp, bm)
    return bm, n_tiles * bm


def _vmem_limit_bytes(bm, tk, Dpad, Kpad):
    footprint = (2 * bm * tk * 4            # f32 pixel tile, double-buffered
                 + 2 * tk * Dpad * 2        # bf16 folded encoder weight tile
                 + 2 * Dpad * Kpad * 4      # SVM weights
                 + 2 * 8 * Kpad * 4         # bias (sublane-padded)
                 + bm * Dpad * 4            # feat_acc scratch
                 + 2 * bm * Kpad * 4)       # output tile
    # Raise v5e's 16 MiB scoped default when tiles need it; stay well under
    # v7x's 64 MiB physical VMEM (v5e/v6e have 128 MiB, so this cap is safe).
    return min(max(32 << 20, footprint + (8 << 20)), 60 << 20)


def model_wrapper_forward(images, params: ModelWrapperParams, *, bm_cap=512):
    """images: (B, C, H, W) NCHW float32 (already resized/cropped, C == 3)."""
    B, C, H, W = images.shape
    assert (C, H, W) == params.image_shape
    CHW, CHWp, tk = params.CHW, params.CHWp, params.tk
    Dpad, Kpad = params.Dpad, params.Kpad

    bm, Bpad = _pick_batch_tiling(B, bm_cap)

    # Flatten is free (contiguous NCHW); pad only if the tail actually needs it.
    x_flat = images.reshape(B, CHW).astype(jnp.float32)
    if Bpad != B or CHWp != CHW:
        x_flat = jnp.pad(x_flat, ((0, Bpad - B), (0, CHWp - CHW)))

    grid = (Bpad // bm, CHWp // tk)

    out = pl.pallas_call(
        _model_wrapper_kernel,
        out_shape=jax.ShapeDtypeStruct((Bpad, Kpad), jnp.float32),
        grid_spec=pltpu.PrefetchScalarGridSpec(
            num_scalar_prefetch=0,
            grid=grid,
            in_specs=[
                pl.BlockSpec((bm, tk), lambda i, k: (i, k)),        # pixels (f32)
                pl.BlockSpec((tk, Dpad), lambda i, k: (k, 0)),      # enc weights
                pl.BlockSpec((Dpad, Kpad), lambda i, k: (0, 0)),    # svm weights
                pl.BlockSpec((1, Kpad), lambda i, k: (0, 0)),       # svm bias
            ],
            out_specs=pl.BlockSpec((bm, Kpad), lambda i, k: (i, 0)),
            scratch_shapes=[pltpu.VMEM((bm, Dpad), jnp.float32)],
        ),
        # Batch tiles independent (megacore); CHW reduction accumulated, so it
        # is "arbitrary" and last.
        compiler_params=pltpu.CompilerParams(
            dimension_semantics=("parallel", "arbitrary"),
            vmem_limit_bytes=_vmem_limit_bytes(bm, tk, Dpad, Kpad)),
    )(x_flat, params.w_enc, params.w_svm, params.b)

    return out[:B, :params.K]


if __name__ == "__main__":
    key = jax.random.PRNGKey(0)
    k_img, k_enc, k_svm, k_b = jax.random.split(key, 4)

    # Small shapes consistent with the forward: NCHW RGB images.
    B, C, H, W = 2, 3, 16, 16
    D = 64      # synthetic CLIP embedding dim
    K = 8       # number of concept SVMs (decision values per concept)

    images = jax.random.uniform(k_img, (B, C, H, W), jnp.float32)          # pixel-like [0,1)
    w_enc = jax.random.normal(k_enc, (C * H * W, D), jnp.float32) * 0.02   # "encode_image"
    w_svm = jax.random.normal(k_svm, (D, K), jnp.float32) * 0.1            # SVM weights
    b_svm = jax.random.normal(k_b, (K,), jnp.float32) * 0.01               # SVM bias

    # One-time, model-load-time weight folding / padding (hoisted out of the
    # forward).  tk_cap=256 exercises the multi-step CHW reduction grid here.
    params = prepare_model_wrapper_params(w_enc, w_svm, b_svm, (C, H, W),
                                          tk_cap=256)

    out = model_wrapper_forward(images, params)
    out = jax.block_until_ready(out)

    # Sanity check against a pure-JAX f32 reference of the original math.
    mean = jnp.asarray(_CLIP_MEAN, jnp.float32).reshape(1, C, 1, 1)
    std = jnp.asarray(_CLIP_STD, jnp.float32).reshape(1, C, 1, 1)
    ref = ((images - mean) / std).reshape(B, -1) @ w_enc @ w_svm + b_svm[None, :]
    assert out.shape == (B, K)
    # bf16 matmul operands (f32 accumulate) => loosened tolerance vs f32 ref.
    assert jnp.allclose(out, ref, atol=2e-2, rtol=2e-2)

    print("KERNEL_OK")
</pallas_src>

<mosaic_0001>
module attributes {stable_mosaic.version = 11 : i64} {
  func.func @_model_wrapper_kernel(%arg0: i32, %arg1: i32, %arg2: memref<8x256xf32, #tpu.memory_space<vmem>>, %arg3: memref<256x256xbf16, #tpu.memory_space<vmem>>, %arg4: memref<256x128xf32, #tpu.memory_space<vmem>>, %arg5: memref<1x128xf32, #tpu.memory_space<vmem>>, %arg6: memref<8x128xf32, #tpu.memory_space<vmem>>, %arg7: memref<8x256xf32, #tpu.memory_space<vmem>>) attributes {dimension_semantics = [#tpu.dimension_semantics<parallel>, #tpu.dimension_semantics<arbitrary>], iteration_bounds = array<i64: 1, 3>, scalar_prefetch = 0 : i64, scratch_operands = 1 : i64, tpu.core_type = #tpu.core_type<tc>, window_params = [{transform_indices = @transform_0, window_bounds = array<i64: 8, 256>}, {transform_indices = @transform_1, window_bounds = array<i64: 256, 256>}, {pipeline_mode = #tpu.pipeline_mode<synchronous>, transform_indices = @transform_2, window_bounds = array<i64: 256, 128>}, {pipeline_mode = #tpu.pipeline_mode<synchronous>, transform_indices = @transform_3, window_bounds = array<i64: 1, 128>}, {transform_indices = @transform_4, window_bounds = array<i64: 8, 128>}]} {
    %c0_i32 = arith.constant 0 : i32
    %0 = arith.cmpi eq, %arg1, %c0_i32 : i32
    %1 = arith.extui %0 : i1 to i32
    %c0_i32_0 = arith.constant 0 : i32
    %2 = arith.cmpi ne, %1, %c0_i32_0 : i32
    scf.if %2 {
      %cst_9 = arith.constant 0.000000e+00 : f32
      %13 = vector.broadcast %cst_9 : f32 to vector<8x256xf32>
      %c0_10 = arith.constant 0 : index
      %c0_11 = arith.constant 0 : index
      %14 = vector.load %arg7[%c0_10, %c0_11] : memref<8x256xf32, #tpu.memory_space<vmem>>, vector<8x256xf32>
      tpu.vector_store %arg7[%c0_10, %c0_11], %13 {strides = array<i32>} : memref<8x256xf32, #tpu.memory_space<vmem>>, vector<8x256xf32>,
    } else {
    }
    %c0 = arith.constant 0 : index
    %c0_1 = arith.constant 0 : index
    %3 = vector.load %arg7[%c0, %c0_1] : memref<8x256xf32, #tpu.memory_space<vmem>>, vector<8x256xf32>
    %c0_2 = arith.constant 0 : index
    %c0_3 = arith.constant 0 : index
    %4 = vector.load %arg2[%c0_2, %c0_3] : memref<8x256xf32, #tpu.memory_space<vmem>>, vector<8x256xf32>
    %5 = arith.truncf %4 : vector<8x256xf32> to vector<8x256xbf16>
    %c0_4 = arith.constant 0 : index
    %c0_5 = arith.constant 0 : index
    %6 = vector.load %arg3[%c0_4, %c0_5] : memref<256x256xbf16, #tpu.memory_space<vmem>>, vector<256x256xbf16>
    %cst = arith.constant dense<0.000000e+00> : vector<8x256xf32>
    %7 = tpu.matmul %5, %6, %cst {dimension_numbers = #tpu.dot_dimension_numbers<[1], [0], [0], [1], [0, 0, 1, 1], [], []>} : vector<8x256xbf16>, vector<256x256xbf16>, vector<8x256xf32> -> vector<8x256xf32>
    %8 = arith.addf %3, %7 : vector<8x256xf32>
    %c0_6 = arith.constant 0 : index
    %c0_7 = arith.constant 0 : index
    %9 = vector.load %arg7[%c0_6, %c0_7] : memref<8x256xf32, #tpu.memory_space<vmem>>, vector<8x256xf32>
    tpu.vector_store %arg7[%c0_6, %c0_7], %8 {strides = array<i32>} : memref<8x256xf32, #tpu.memory_space<vmem>>, vector<8x256xf32>,
    %c2_i32 = arith.constant 2 : i32
    %10 = arith.cmpi eq, %arg1, %c2_i32 : i32
    %11 = arith.extui %10 : i1 to i32
    %c0_i32_8 = arith.constant 0 : i32
    %12 = arith.cmpi ne, %11, %c0_i32_8 : i32
    scf.if %12 {
      %c0_9 = arith.constant 0 : index
      %c0_10 = arith.constant 0 : index
      %13 = vector.load %arg7[%c0_9, %c0_10] : memref<8x256xf32, #tpu.memory_space<vmem>>, vector<8x256xf32>
      %c0_11 = arith.constant 0 : index
      %c0_12 = arith.constant 0 : index
      %14 = vector.load %arg4[%c0_11, %c0_12] : memref<256x128xf32, #tpu.memory_space<vmem>>, vector<256x128xf32>
      %cst_13 = arith.constant dense<0.000000e+00> : vector<8x128xf32>
      %15 = tpu.matmul %13, %14, %cst_13 {dimension_numbers = #tpu.dot_dimension_numbers<[1], [0], [0], [1], [0, 0, 1, 1], [], []>} : vector<8x256xf32>, vector<256x128xf32>, vector<8x128xf32> -> vector<8x128xf32>
      %c0_14 = arith.constant 0 : index
      %c0_15 = arith.constant 0 : index
      %16 = vector.load %arg5[%c0_14, %c0_15] : memref<1x128xf32, #tpu.memory_space<vmem>>, vector<1x128xf32>
      %17 = vector.broadcast %16 : vector<1x128xf32> to vector<8x128xf32>
      %18 = arith.addf %15, %17 : vector<8x128xf32>
      %c0_16 = arith.constant 0 : index
      %c0_17 = arith.constant 0 : index
      %19 = vector.load %arg6[%c0_16, %c0_17] : memref<8x128xf32, #tpu.memory_space<vmem>>, vector<8x128xf32>
      tpu.vector_store %arg6[%c0_16, %c0_17], %18 {strides = array<i32>} : memref<8x128xf32, #tpu.memory_space<vmem>>, vector<8x128xf32>,
    } else {
    }
    return
  }
  func.func @transform_0(%arg0: i32, %arg1: i32) -> (i32, i32) {
    %c0_i32 = arith.constant 0 : i32
    return %arg0, %arg1 : i32, i32
  }
  func.func @transform_1(%arg0: i32, %arg1: i32) -> (i32, i32) {
    %c0_i32 = arith.constant 0 : i32
    %c0_i32_0 = arith.constant 0 : i32
    return %arg1, %c0_i32 : i32, i32
  }
  func.func @transform_2(%arg0: i32, %arg1: i32) -> (i32, i32) {
    %c0_i32 = arith.constant 0 : i32
    %c0_i32_0 = arith.constant 0 : i32
    %c0_i32_1 = arith.constant 0 : i32
    return %c0_i32, %c0_i32_0 : i32, i32
  }
  func.func @transform_3(%arg0: i32, %arg1: i32) -> (i32, i32) {
    %c0_i32 = arith.constant 0 : i32
    %c0_i32_0 = arith.constant 0 : i32
    %c0_i32_1 = arith.constant 0 : i32
    return %c0_i32, %c0_i32_0 : i32, i32
  }
  func.func @transform_4(%arg0: i32, %arg1: i32) -> (i32, i32) {
    %c0_i32 = arith.constant 0 : i32
    %c0_i32_0 = arith.constant 0 : i32
    return %arg0, %c0_i32 : i32, i32
  }
}

</mosaic_0001>

<bundles_post_ra>
// kernel: tpu_custom_call.1
= control target key start
LH: loop header
LB: loop body
LE: loop exit
PB: predicated region body
PF: predicated region fallthrough
CT: control target
= control target key end

     0   :  { %9 = vsyncpa [#allocation4], 0  ;;  %s1367_s0 = inlined_call_operand.hbm [shape: f32[8,768], index: 0, kind: input, shape index: {}]   ;;  %s1368_s1 = inlined_call_operand.hbm [shape: bf16[768,256], index: 1, kind: input, shape index: {}]   ;;  %s1369_s2 = inlined_call_operand.hbm [shape: f32[256,128], index: 2, kind: input, shape index: {}]   ;;  %s1370_s3 = inlined_call_operand.vmem [shape: f32[1,128], index: 3, kind: input, shape index: {}]   ;;  %s1371_s4 = inlined_call_operand.hbm [shape: f32[8,128], index: 4, kind: output, shape index: {}]  }
   0x1   :  { %11 = vsyncpa [#allocation4 + $0x1], 0 }
   0x2   :  { %12 = vsyncpa [#allocation7], 0 }
   0x3   :  { %14 = vsyncpa [#allocation7 + $0x1], 0 }
   0x4   :  { %15 = vsyncpa [#allocation5], 0  ;;  %s1173_s15 = smov 0   ;;  %s1175_s16 = smov 0  }
   0x5   :  { %s1177_s17 = smov 0   ;;  %s1179_s18 = smov 0  }
   0x6   :  { %s1181_s19 = smov 0   ;;  %s1183_s20 = smov 0  }
   0x7 LB: > { %s1202_s21 = sadd.s32 4294967295, %s1139_s20   ;;  %p55_p0 = scmp.ne.s32.totalorder %s1123_s16, %s1119_s15  ;;  %s1139_s20 = sphi %s1183_s20, %s21_s20   ;;  %s1135_s19 = sphi %s1181_s19, %s1384_s19   ;;  %s1131_s18 = sphi %s1179_s18, %s1383_s18   ;;  %s1127_s17 = sphi %s1177_s17, %s1382_s17   ;;  %s1123_s16 = sphi %s1175_s16, %s1381_s16   ;;  %s1119_s15 = sphi %s1173_s15, %s1380_s15  }
   0x8   : > { %p56_p1 = scmp.eq.s32.totalorder %s1202_s21, 0  ;;  %p751_p2 = scmp.ge.s32.totalorder %s1139_s20, 1 }
   0x9   : > { %p160_p3 = scmp.lt.s32.totalorder %s1139_s20, 4  ;;  %s1141_s24 = smov [#allocation8]  }
   0xa   : > { %p1210_p4 = por %p56_p1, %p55_p0  ;;  %s172_s25 = sshll.u32 %s1141_s24, 4  ;;  %s173_s25 = int_to_ptr.vmem [resolvable:$true] %s172_s25 }
   0xb   : > { %p1214_p5 = pnand %p751_p2, %p160_p3  ;;  %s30_s27 = sadd.s32 1, %s1135_s19 }
   0xc   : > { %s982_s28 = scalar_lea.vmem %s173_s25, 4096  ;;  %p990_p12 = scmp.lt.s32.totalorder %s173_s25, %s173_s25 }
   0xd   : > { %p854_p6 = pneg %p1214_p5  ;;  %p983_p9 = scmp.ne.s32.totalorder %s173_s25, %s982_s28 }
   0xe   : > { %p991_p13 = scmp.lt.s32.totalorder %s982_s28, %s982_s28 }
   0xf   : > { %p1222_p7 = pnand %p854_p6, %p56_p1 }
  0x10   : > { %p992_p0 = por %p991_p13, %p990_p12 }
  0x11   : > { %p973_p8 = pneg %p1222_p7 }
  0x13   : > { %p985_p10 = pnand %p983_p9, %p973_p8 }
  0x15   : > { %p986_p11 = pneg %p985_p10 }
  0x17   : > { %p993_p2 = pnand %p992_p0, %p986_p11 }
  0x19   : > { %996 = shalt.err (!%p993_p2)
}
  0x1a   : > { %s1372_s29 = smov 128   ;;  %s1373_s30 = smov 8  }
  0x1b   : > { %857 = dma.hbm_to_vmem [thread:$0]  (!%p1222_p7), %s1369_s2, 4096, %s173_s25, [#allocation7], %s1372_s29, %s1372_s29, %s1373_s30  }
  0x1c   : > { %p31_p3 = scmp.ge.s32.totalorder %s30_s27, 3  ;;  %s42_s7 = sadd.s32 1, %s1127_s17 }
  0x1d   : > { %p49_p6 = scmp.ne.s32.totalorder %s1127_s17, %s1123_s16  ;;  %p50_p8 = scmp.eq.s32.totalorder %s1139_s20, 0 }
  0x1e   : > { %s1386_s27 = smov (%p31_p3, %s30_s27), 0  ;;  %p866_p10 = scmp.lt.s32.totalorder %s1139_s20, 3 }
  0x1f   : > { %p51_p9 = por %p50_p8, %p49_p6  ;;  %s38_s8 = ssub.s32 %s1135_s19, %s1386_s27 }
  0x20   : > { %s189_s9 = sand.u32 1, %s1127_s17   ;;  %p40_p11 = scmp.eq.s32.totalorder %s38_s8, 0 }
  0x21   : > { %s754_s10 = sshll.u32 %s189_s9, 4  ;;  %s804_s11 = sshll.u32 %s1135_s19, 8 }
  0x22   : > { %s1249_s12 = scalar_select %p40_p11, %s1127_s17, %s42_s7  }
  0x23   : > { %s201_s15 = scalar_lea.hbm %s1367_s0, %s804_s11  ;;  %s193_s24 = scalar_lea.vmem [#allocation3], %s754_s10 }
  0x24   : > { %s203_s25 = sshll.u32 %s193_s24, 4  ;;  %p1254_p7 = pnand %p866_p10, %p51_p9  ;;  %s204_s25 = int_to_ptr.vmem [resolvable:$true] %s203_s25 }
  0x25   : > { %s757_s28 = sshll.u32 %s189_s9, 8  ;;  %s190_s5 = scalar_lea.sflag [#allocation4], %s189_s9 }
  0x26   : > { %p999_p12 = pneg %p1254_p7  ;;  %s1010_s6 = scalar_lea.vmem %s204_s25, 256 }
  0x27   : > { %p1011_p13 = scmp.ne.s32.totalorder %s204_s25, %s1010_s6  ;;  %s1144_s7 = smov [#allocation3]  }
  0x28   : > { %s1015_s8 = sshll.u32 %s1144_s7, 4  ;;  %s1016_s8 = int_to_ptr.vmem [resolvable:$false] %s1015_s8 }
  0x29   : > { %p1013_p0 = pnand %p1011_p13, %p999_p12  ;;  %s1017_s10 = scalar_lea.vmem %s1016_s8, 512 }
  0x2a   : > { %p1018_p3 = scmp.lt.s32.totalorder %s204_s25, %s1016_s8  ;;  %p1019_p6 = scmp.lt.s32.totalorder %s1017_s10, %s1010_s6 }
  0x2b   : > { %p1014_p2 = pneg %p1013_p0 }
  0x2c   : > { %p1020_p8 = por %p1019_p6, %p1018_p3 }
  0x2e   : > { %p1021_p9 = pnand %p1020_p8, %p1014_p2 }
  0x30   : > { %1024 = shalt.err (!%p1021_p9)
}
  0x31   : > { %861 = dma.hbm_to_vmem [thread:$0]  (!%p1254_p7), %s201_s15, 256, %s204_s25, %s190_s5  }
  0x32   : > { %s806_s9 = sshll.u32 %s1135_s19, 12  ;;  %s214_s11 = scalar_lea.vmem [#allocation6], %s757_s28 }
  0x33   : > { %s222_s13 = sshll.u32 %s214_s11, 4  ;;  %s210_s14 = sand.u32 1, %s1139_s20   ;;  %s223_s13 = int_to_ptr.vmem [resolvable:$true] %s222_s13 }
  0x34   : > { %s221_s29 = scalar_lea.hbm %s1368_s1, %s806_s9  ;;  %s211_s8 = scalar_lea.sflag [#allocation7], %s210_s14 }
  0x35   : > { %s1038_s6 = scalar_lea.vmem %s223_s13, 4096  ;;  %s1145_s10 = smov [#allocation6]  }
  0x36   : > { %p1039_p10 = scmp.ne.s32.totalorder %s223_s13, %s1038_s6  ;;  %s1043_s30 = sshll.u32 %s1145_s10, 4  ;;  %s1044_s30 = int_to_ptr.vmem [resolvable:$false] %s1043_s30 }
  0x37   : > { %s1045_s15 = scalar_lea.vmem %s1044_s30, 8192  ;;  %p1046_p0 = scmp.lt.s32.totalorder %s223_s13, %s1044_s30 }
  0x38   : > { %p1041_p11 = pnand %p1039_p10, %p999_p12  ;;  %p1047_p2 = scmp.lt.s32.totalorder %s1045_s15, %s1038_s6 }
  0x3a   : > { %p1042_p13 = pneg %p1041_p11  ;;  %p1048_p3 = por %p1047_p2, %p1046_p0 }
  0x3c   : > { %p1049_p6 = pnand %p1048_p3, %p1042_p13 }
  0x3e   : > { %1052 = shalt.err (!%p1049_p6)
}
  0x3f   : > { %s1378_s25 = smov 8   ;;  %s1379_s28 = smov 128  }
  0x40   : > { %864 = dma.hbm_to_vmem [thread:$0]  (!%p1254_p7), %s221_s29, 4096, %s223_s13, %s211_s8, %s1379_s28, %s1379_s28, %s1378_s25  }
  0x41   : > { %234 = sbr.rel (%p1214_p5) target bundleno = 597 (0x255), region = 36  ;;  %s236_s5 = sand.u32 (!%p1214_p5), 1, %s1123_s16  }
  0x42   : > { %s762_s9 = sshll.u32 (!%p1214_p5), %s236_s5, 4  ;;  %s237_s11 = scalar_lea.sflag (!%p1214_p5), [#allocation4], %s236_s5 }
  0x43   : > { %s1281_s14 = scalar_lea.vmem (!%p1214_p5), [#allocation3], %s762_s9 }
  0x46   : > { %1102 = dma.done.wait (%p1210_p4), %s237_s11, 256  }
  0x47   : > { %1104 = vsyncadd (%p1210_p4), %s237_s11, 4294967040  ;;  %s245_s30 = sand.u32 1, %s1202_s21   ;;  %s763_s26 = sshll.u32 %s236_s5, 8 }
  0x48   : > { %s246_s29 = scalar_lea.sflag [#allocation7], %s245_s30  ;;  %s1288_s13 = scalar_lea.vmem [#allocation6], %s763_s26 }
  0x49   : > { %1106 = dma.done.wait (%p1210_p4), %s246_s29, 4096  }
  0x4a   : > { %1108 = vsyncadd (%p1210_p4), %s246_s29, 4294963200 }
  0x4b   : > { %1110 = dma.done.wait (%p56_p1), [#allocation7], 4096  }
  0x4c   : > { %1112 = vsyncadd (%p56_p1), [#allocation7], 4294963200  ;;  %p765_p5 = scmp.ne.s32.totalorder %s1131_s18, 0 }
  0x4e   : > { %283 = sbr.rel (%p765_p5) target bundleno = 85 (0x55), region = 52 }
  0x53   : > { %v1146_v0 = vmov 0.0  }
  0x54   : > { %284 = vst [vmem:[#allocation2] sm:$0xff] %v1146_v0  ;;  %285 = vst [vmem:[#allocation2 + $0x8] sm:$0xff] %v1146_v0 }
  0x55 PF: > { %v923_v1 = vld [vmem:[%s1288_s13 + $0x74] ss:$8 sps:$4 sm:$0xff]   ;;  %v925_v2 = vld [vmem:[%s1288_s13 + $0x70] ss:$8 sps:$4 sm:$0xff]   ;;  %v926_v3 = vld [vmem:[%s1288_s13 + $0x64] ss:$8 sps:$4 sm:$0xff]  }
  0x56   : > { %484 = vmatprep.subr.bf16.mxu0 %v923_v1  ;;  %v928_v4 = vld [vmem:[%s1288_s13 + $0x60] ss:$8 sps:$4 sm:$0xff]   ;;  %v929_v5 = vld [vmem:[%s1288_s13 + $0x54] ss:$8 sps:$4 sm:$0xff]   ;;  %v931_v6 = vld [vmem:[%s1288_s13 + $0x50] ss:$8 sps:$4 sm:$0xff]  }
  0x57   : > { %485 = vmatpush1.bf16.msra.mxu0 %v925_v2  ;;  %v932_v7 = vld [vmem:[%s1288_s13 + $0x44] ss:$8 sps:$4 sm:$0xff]   ;;  %v934_v8 = vld [vmem:[%s1288_s13 + $0x40] ss:$8 sps:$4 sm:$0xff]   ;;  %v935_v9 = vld [vmem:[%s1288_s13 + $0x34] ss:$8 sps:$4 sm:$0xff]  }
  0x58   : > { %486 = vmatprep.subr.bf16.mxu0 %v926_v3  ;;  %v937_v10 = vld [vmem:[%s1288_s13 + $0x30] ss:$8 sps:$4 sm:$0xff]   ;;  %v938_v11 = vld [vmem:[%s1288_s13 + $0x24] ss:$8 sps:$4 sm:$0xff]   ;;  %v940_v12 = vld [vmem:[%s1288_s13 + $0x20] ss:$8 sps:$4 sm:$0xff]  }
  0x59   : > { %v941_v13 = vld [vmem:[%s1288_s13 + $0x14] ss:$8 sps:$4 sm:$0xff]   ;;  %v943_v16 = vld [vmem:[%s1288_s13 + $0x10] ss:$8 sps:$4 sm:$0xff]   ;;  %v944_v17 = vld [vmem:[%s1288_s13 + $0x4] ss:$8 sps:$4 sm:$0xff]  }
  0x5a   : > { %v289_v14 = vld [vmem:[%s1281_s14 + $0x8] sm:$0xff]  ;;  %v288_v35 = vld [vmem:[%s1281_s14] sm:$0xff]  ;;  %p798_p1 = scmp.ne.s32.totalorder %s1131_s18, 2 }
  0x5b   : > { %487 = vmatpush1.bf16.msra.mxu0 %v928_v4  ;;  %v291_v15 = vpack.c.bf16 %v289_v14, %v289_v14  ;;  %v946_v18 = vld [vmem:[%s1288_s13] ss:$8 sps:$4 sm:$0xff]   ;;  %v947_v19 = vld [vmem:[%s1288_s13 + $0xf4] ss:$8 sps:$4 sm:$0xff]   ;;  %v949_v20 = vld [vmem:[%s1288_s13 + $0xf0] ss:$8 sps:$4 sm:$0xff]   ;;  %v290_v36 = vpack.c.bf16 %v288_v35, %v288_v35 }
  0x5c   : > { %488 = vmatprep.subr.bf16.mxu0 %v929_v5  ;;  %v950_v21 = vld [vmem:[%s1288_s13 + $0xe4] ss:$8 sps:$4 sm:$0xff]   ;;  %v952_v22 = vld [vmem:[%s1288_s13 + $0xe0] ss:$8 sps:$4 sm:$0xff]   ;;  %v953_v23 = vld [vmem:[%s1288_s13 + $0xd4] ss:$8 sps:$4 sm:$0xff]  }
  0x5d   : > { %516 = vmatprep.mubr.bf16.mxu0 %v291_v15  ;;  %v955_v24 = vld [vmem:[%s1288_s13 + $0xd0] ss:$8 sps:$4 sm:$0xff]   ;;  %v956_v25 = vld [vmem:[%s1288_s13 + $0xc4] ss:$8 sps:$4 sm:$0xff]   ;;  %v958_v26 = vld [vmem:[%s1288_s13 + $0xc0] ss:$8 sps:$4 sm:$0xff]  }
  0x5e   : > { %v959_v27 = vld [vmem:[%s1288_s13 + $0xb4] ss:$8 sps:$4 sm:$0xff]   ;;  %v961_v28 = vld [vmem:[%s1288_s13 + $0xb0] ss:$8 sps:$4 sm:$0xff]   ;;  %v962_v29 = vld [vmem:[%s1288_s13 + $0xa4] ss:$8 sps:$4 sm:$0xff]  }
  0x5f   : > { %489 = vmatpush1.bf16.msra.mxu0 %v931_v6  ;;  %v964_v30 = vld [vmem:[%s1288_s13 + $0xa0] ss:$8 sps:$4 sm:$0xff]   ;;  %v965_v31 = vld [vmem:[%s1288_s13 + $0x94] ss:$8 sps:$4 sm:$0xff]   ;;  %v967_v32 = vld [vmem:[%s1288_s13 + $0x90] ss:$8 sps:$4 sm:$0xff]  }
  0x60   : > { %490 = vmatprep.subr.bf16.mxu0 %v932_v7  ;;  %v968_v33 = vld [vmem:[%s1288_s13 + $0x84] ss:$8 sps:$4 sm:$0xff]   ;;  %v970_v34 = vld [vmem:[%s1288_s13 + $0x80] ss:$8 sps:$4 sm:$0xff]   ;;  %v286_v37 = vld [vmem:[#allocation2] sm:$0xff] }
  0x61   : > { %v287_v39 = vld [vmem:[#allocation2 + $0x8] sm:$0xff] }
  0x63   : > { %491 = vmatpush1.bf16.msra.mxu0 %v934_v8 }
  0x64   : > { %492 = vmatprep.subr.bf16.mxu0 %v935_v9 }
  0x67   : > { %493 = vmatpush1.bf16.msra.mxu0 %v937_v10 }
  0x68   : > { %494 = vmatprep.subr.bf16.mxu0 %v938_v11 }
  0x6b   : > { %495 = vmatpush1.bf16.msra.mxu0 %v940_v12 }
  0x6c   : > { %496 = vmatprep.subr.bf16.mxu0 %v941_v13 }
  0x6f   : > { %497 = vmatpush1.bf16.msra.mxu0 %v943_v16 }
  0x70   : > { %498 = vmatprep.subr.bf16.mxu0 %v944_v17 }
  0x73   : > { %499 = vmatpush1.bf16.msra.mxu0 %v946_v18 }
  0x74   : > { %500 = vmatprep.subr.bf16.mxu0 %v947_v19 }
  0x77   : > { %501 = vmatpush2.bf16.msra.mxu0 %v949_v20 }
  0x78   : > { %502 = vmatprep.subr.bf16.mxu0 %v950_v21 }
  0x7b   : > { %503 = vmatpush2.bf16.msra.mxu0 %v952_v22 }
  0x7c   : > { %504 = vmatprep.subr.bf16.mxu0 %v953_v23 }
  0x7f   : > { %505 = vmatpush2.bf16.msra.mxu0 %v955_v24 }
  0x80   : > { %506 = vmatprep.subr.bf16.mxu0 %v956_v25 }
  0x83   : > { %507 = vmatpush2.bf16.msra.mxu0 %v958_v26 }
  0x84   : > { %508 = vmatprep.subr.bf16.mxu0 %v959_v27 }
  0x87   : > { %509 = vmatpush2.bf16.msra.mxu0 %v961_v28 }
  0x88   : > { %510 = vmatprep.subr.bf16.mxu0 %v962_v29 }
  0x8b   : > { %511 = vmatpush2.bf16.msra.mxu0 %v964_v30 }
  0x8c   : > { %512 = vmatprep.subr.bf16.mxu0 %v965_v31 }
  0x8f   : > { %513 = vmatpush2.bf16.msra.mxu0 %v967_v32 }
  0x90   : > { %514 = vmatprep.subr.bf16.mxu0 %v968_v33 }
  0x93   : > { %515 = vmatpush2.bf16.msra.mxu0 %v970_v34 }
  0x96   : > { %517 = vmatmul.mubr.bf16.vlgmr.msra.gmra.mxu0 %v290_v36 }
 0x156   : > { %v518_v38 = vpop.f32.mrf.mxu0 }
 0x157   : > { %v525_v40 = vadd.f32 %v518_v38, %v286_v37 }
 0x158   : > { %v520_v41 = vpop.f32.mrf.mxu0  ;;  %532 = sbr.rel (%p798_p1) target bundleno = 582 (0x246), region = 56 }
 0x159   : > { %527 = vst [vmem:[#allocation2] sm:$0xff] %v525_v40  ;;  %v526_v42 = vadd.f32 %v520_v41, %v287_v39 }
 0x15a   : > { %v522_v43 = vpop.f32.mrf.mxu0 }
 0x15b   : > { %528 = vst [vmem:[#allocation2 + $0x8] sm:$0xff] %v526_v42 }
 0x15c   : > { %v523_v44 = vpop.f32.mrf.mxu0 }
 0x15d   : > { %v566_v45 = vld [vmem:[#allocation8 + $0xf8] sm:$0xff]  ;;  %v565_v47 = vld [vmem:[#allocation8 + $0xf0] sm:$0xff]  ;;  %v564_v49 = vld [vmem:[#allocation8 + $0xe8] sm:$0xff] }
 0x15e   : > { %v550_v46 = vld [vmem:[#allocation8 + $0x78] sm:$0xff]  ;;  %807 = vmatprep.subr.mxu0 %v566_v45  ;;  %v549_v48 = vld [vmem:[#allocation8 + $0x70] sm:$0xff]  ;;  %v548_v50 = vld [vmem:[#allocation8 + $0x68] sm:$0xff] }
 0x15f   : > { %808 = vmatpush3.msra.mxu0 %v550_v46  ;;  %v563_v51 = vld [vmem:[#allocation8 + $0xe0] sm:$0xff]  ;;  %v562_v53 = vld [vmem:[#allocation8 + $0xd8] sm:$0xff]  ;;  %v561_v55 = vld [vmem:[#allocation8 + $0xd0] sm:$0xff] }
 0x160   : > { %809 = vmatprep.subr.mxu0 %v565_v47  ;;  %v547_v52 = vld [vmem:[#allocation8 + $0x60] sm:$0xff]  ;;  %v546_v54 = vld [vmem:[#allocation8 + $0x58] sm:$0xff]  ;;  %v545_v56 = vld [vmem:[#allocation8 + $0x50] sm:$0xff] }
 0x161   : > { %810 = vmatpush3.msra.mxu0 %v549_v48  ;;  %v560_v57 = vld [vmem:[#allocation8 + $0xc8] sm:$0xff]  ;;  %v559_v60 = vld [vmem:[#allocation8 + $0xc0] sm:$0xff]  ;;  %v558_v62 = vld [vmem:[#allocation8 + $0xb8] sm:$0xff] }
 0x162   : > { %811 = vmatprep.subr.mxu0 %v564_v49  ;;  %v534_v58 = vld [vmem:[#allocation2 + $0x8] sm:$0xff]  ;;  %v544_v59 = vld [vmem:[#allocation8 + $0x48] sm:$0xff]  ;;  %v543_v61 = vld [vmem:[#allocation8 + $0x40] sm:$0xff] }
 0x163   : > { %812 = vmatpush3.msra.mxu0 %v548_v50  ;;  %638 = vmatprep.mubr.f32.mxu0 %v534_v58  ;;  %v542_v63 = vld [vmem:[#allocation8 + $0x38] sm:$0xff]  ;;  %v557_v0 = vld [vmem:[#allocation8 + $0xb0] sm:$0xff]  ;;  %v556_v2 = vld [vmem:[#allocation8 + $0xa8] sm:$0xff] }
 0x164   : > { %813 = vmatprep.subr.mxu0 %v563_v51  ;;  %v541_v1 = vld [vmem:[#allocation8 + $0x30] sm:$0xff]  ;;  %v540_v3 = vld [vmem:[#allocation8 + $0x28] sm:$0xff]  ;;  %v555_v4 = vld [vmem:[#allocation8 + $0xa0] sm:$0xff] }
 0x165   : > { %814 = vmatpush3.msra.mxu0 %v547_v52  ;;  %v539_v5 = vld [vmem:[#allocation8 + $0x20] sm:$0xff]  ;;  %v554_v6 = vld [vmem:[#allocation8 + $0x98] sm:$0xff]  ;;  %v553_v8 = vld [vmem:[#allocation8 + $0x90] sm:$0xff] }
 0x166   : > { %815 = vmatprep.subr.mxu0 %v562_v53  ;;  %v538_v7 = vld [vmem:[#allocation8 + $0x18] sm:$0xff]  ;;  %v537_v9 = vld [vmem:[#allocation8 + $0x10] sm:$0xff]  ;;  %v552_v10 = vld [vmem:[#allocation8 + $0x88] sm:$0xff] }
 0x167   : > { %816 = vmatpush3.msra.mxu0 %v546_v54  ;;  %v536_v11 = vld [vmem:[#allocation8 + $0x8] sm:$0xff]  ;;  %v551_v12 = vld [vmem:[#allocation8 + $0x80] sm:$0xff]  ;;  %v533_v14 = vld [vmem:[#allocation2] sm:$0xff] }
 0x168   : > { %817 = vmatprep.subr.mxu0 %v561_v55  ;;  %v535_v13 = vld [vmem:[#allocation8] sm:$0xff]  ;;  %v799_v16 = vld [vmem:[%s1370_s3] ss:$0 sm:$0xff] }
 0x169   : > { %818 = vmatpush3.msra.mxu0 %v545_v56 }
 0x16a   : > { %819 = vmatprep.subr.mxu0 %v560_v57 }
 0x16b   : > { %820 = vmatpush3.msra.mxu0 %v544_v59 }
 0x16c   : > { %821 = vmatprep.subr.mxu0 %v559_v60 }
 0x16d   : > { %822 = vmatpush3.msra.mxu0 %v543_v61 }
 0x16e   : > { %823 = vmatprep.subr.mxu0 %v558_v62 }
 0x16f   : > { %824 = vmatpush3.msra.mxu0 %v542_v63 }
 0x170   : > { %825 = vmatprep.subr.mxu0 %v557_v0 }
 0x171   : > { %826 = vmatpush3.msra.mxu0 %v541_v1 }
 0x172   : > { %827 = vmatprep.subr.mxu0 %v556_v2 }
 0x173   : > { %828 = vmatpush3.msra.mxu0 %v540_v3 }
 0x174   : > { %829 = vmatprep.subr.mxu0 %v555_v4 }
 0x175   : > { %830 = vmatpush3.msra.mxu0 %v539_v5 }
 0x176   : > { %831 = vmatprep.subr.mxu0 %v554_v6 }
 0x177   : > { %832 = vmatpush3.msra.mxu0 %v538_v7 }
 0x178   : > { %833 = vmatprep.subr.mxu0 %v553_v8 }
 0x179   : > { %834 = vmatpush3.msra.mxu0 %v537_v9 }
 0x17a   : > { %835 = vmatprep.subr.mxu0 %v552_v10 }
 0x17b   : > { %836 = vmatpush3.msra.mxu0 %v536_v11 }
 0x17c   : > { %837 = vmatprep.subr.mxu0 %v551_v12 }
 0x17d   : > { %838 = vmatpush3.msra.mxu0 %v535_v13 }
 0x17e   : > { %639 = vmatmul.mubr.f32.vlgmr.msra.gmra.mxu0 %v533_v14 }
 0x23e   : > { %v839_v15 = vpop.f32.mrf.mxu0 }
 0x240   : > { %v840_v17 = vpop.f32.mrf.mxu0 }
 0x241   : > { %v841_v18 = vadd.f32 %v840_v17, %v839_v15 }
 0x243   : > { %v641_v19 = vadd.f32 %v841_v18, %v799_v16 }
 0x245   : > { %644 = vst [vmem:[#allocation9] sm:$0xff] %v641_v19 }
 0x246 PF: > { %p868_p4 = scmp.eq.s32.totalorder %s1202_s21, 2  ;;  %s1147_s23 = smov [#allocation9]  }
 0x247   : > { %s654_s24 = sshll.u32 %s1147_s23, 4  ;;  %s655_s24 = int_to_ptr.vmem [resolvable:$true] %s654_s24 }
 0x248   : > { %s1053_s7 = scalar_lea.vmem %s655_s24, 128  ;;  %p1060_p9 = scmp.lt.s32.totalorder %s655_s24, %s655_s24 }
 0x249   : > { %p1054_p7 = scmp.ne.s32.totalorder %s655_s24, %s1053_s7  ;;  %p1061_p10 = scmp.lt.s32.totalorder %s1053_s7, %s1053_s7 }
 0x24b   : > { %p1055_p12 = pnand %p1054_p7, %p868_p4  ;;  %p1062_p11 = por %p1061_p10, %p1060_p9 }
 0x24d   : > { %p1056_p8 = pneg %p1055_p12 }
 0x24f   : > { %p1063_p13 = pnand %p1062_p11, %p1056_p8 }
 0x251   : > { %1066 = shalt.err (!%p1063_p13)
}
 0x252   : > { %851 = dma.vmem_to_hbm [thread:$0]  (%p868_p4), %s655_s24, 128, %s1371_s4, [#allocation5]  }
 0x253   : > { %1114 = dma.done.wait (%p868_p4), [#allocation5], 128  }
 0x254   : > { %1116 = vsyncadd (%p868_p4), [#allocation5], 4294967168 }
 0x255 PF: > { %s21_s20 = sadd.s32 1, %s1139_s20   ;;  %s1380_s15 = smov %s1123_s16 }
 0x256   : > { %p18_p0 = scmp.ge.s32.totalorder %s21_s20, 5   ;;  %s1381_s16 = smov %s1127_s17 }
 0x257   : > { %s1382_s17 = smov %s1249_s12  ;;  %s1383_s18 = smov %s1135_s19 }
 0x258   : > { %s1384_s19 = smov %s1386_s27  ;;  %20 = sbr.rel (!%p18_p0) target bundleno = 7 (0x7), region = 99 }
 0x25d   :  { %667 = vsyncpa [#allocation4], 1 }
 0x25e   :  { %669 = vsyncpa [#allocation4 + $0x1], 1 }
 0x25f   :  { %670 = vsyncpa [#allocation7], 1 }
 0x260   :  { %672 = vsyncpa [#allocation7 + $0x1], 1 }
 0x261   :  { %673 = vsyncpa [#allocation5], 1 }
 0x262   :  { %675 = vsyncpa [#allocation5 + $0x1], 1 }

</bundles_post_ra>
